<compile_context>
chip_gen: v6e
topology: v6e:2x2x1
jax: 0.10.0
libtpu: 0.0.40
codegen_flags: <defaults>
</compile_context>

<pallas_src>
import math

import jax
import jax.numpy as jnp
from jax import lax
from jax.experimental import pallas as pl
from jax.experimental.pallas import tpu as pltpu


def _round_up(x, m):
    return (x + m - 1) // m * m


# Tile caps chosen to fit the scoped-VMEM default (32 MiB) on every
# generation, including v7x's smaller 64 MiB physical VMEM.
_MAX_TM = 512
_MAX_TN = 512
_MAX_TK = 1024


# ---------------------------------------------------------------------------
# Kernels
# ---------------------------------------------------------------------------
def _h_i_kernel_acc_in_out(x_ref, w_ref, b_ref, o_ref):
    """f32 output: accumulate directly into the resident output block."""
    # x_ref : (tm, tk)  features tile (compute dtype)
    # w_ref : (tk, tn)  pre-transposed weights tile [K, N]
    # b_ref : (1, tn)   f32 bias row tile
    # o_ref : (tm, tn)  f32 output tile, resident across the K axis
    k = pl.program_id(2)

    @pl.when(k == 0)
    def _():
        o_ref[...] = jnp.zeros_like(o_ref)

    o_ref[...] += jnp.dot(x_ref[...], w_ref[...],
                          preferred_element_type=jnp.float32)

    @pl.when(k == pl.num_programs(2) - 1)
    def _():
        o_ref[...] += b_ref[...].astype(jnp.float32)


def _h_i_kernel_scratch(x_ref, w_ref, b_ref, o_ref, acc_ref):
    """Low-precision output: f32 scratch accumulator, cast on finalize."""
    k = pl.program_id(2)

    @pl.when(k == 0)
    def _():
        acc_ref[...] = jnp.zeros_like(acc_ref)

    acc_ref[...] += jnp.dot(x_ref[...], w_ref[...],
                            preferred_element_type=jnp.float32)

    @pl.when(k == pl.num_programs(2) - 1)
    def _():
        o_ref[...] = (acc_ref[...] + b_ref[...].astype(jnp.float32)).astype(
            o_ref.dtype
        )


# ---------------------------------------------------------------------------
# Forward builder: prepares parameters once, returns a jitted forward()
# ---------------------------------------------------------------------------
def make_h_i_forward(weights, bias, *, compute_dtype=jnp.bfloat16,
                     max_tm=_MAX_TM, max_tn=_MAX_TN, max_tk=_MAX_TK):
    """weights: [out_features, in_features]; bias: [out_features].

    Returns forward(features[B, in_features]) -> [B, out_features] in
    features.dtype, equal to features @ weights.T + bias.
    """
    N, K = weights.shape
    assert bias.shape == (N,), "bias shape mismatch"

    param_dtype = jnp.dtype(compute_dtype) if compute_dtype is not None \
        else jnp.dtype(weights.dtype)

    # Clamp N/K tiles to the lane-rounded problem (tiny heads -> one
    # lane-dense block, unmasked full-lane stores even if N < 128).
    tn = min(max_tn, _round_up(N, 128))
    tk = min(max_tk, _round_up(K, 128))
    Np = _round_up(N, tn)
    Kp = _round_up(K, tk)

    # --- one-time parameter preparation (hoisted out of the hot path) ------
    # Pre-transpose to [K, N] so the kernel contracts on the weight tile's
    # leading dim (canonical MXU layout, no per-step vxpose), pad, cast.
    w_kn = jnp.asarray(weights).T
    if (Kp, Np) != (K, N):
        w_kn = jnp.pad(w_kn, ((0, Kp - K), (0, Np - N)))
    w_kn = w_kn.astype(param_dtype)

    b_row = jnp.asarray(bias).astype(jnp.float32)      # epilogue stays in f32
    if Np != N:
        b_row = jnp.pad(b_row, (0, Np - N))
    b_row = b_row.reshape(1, Np)

    # bf16 packs two rows per sublane -> round the batch tile to 16.
    sub = 16 if param_dtype == jnp.dtype(jnp.bfloat16) else 8

    @jax.jit
    def forward(features):
        B, Kin = features.shape
        assert Kin == K, "in_features mismatch"
        out_dtype = features.dtype

        tm = min(max_tm, _round_up(B, sub))
        Mp = _round_up(B, tm)

        x = features.astype(param_dtype)
        if (Mp, Kp) != (B, K):
            x = jnp.pad(x, ((0, Mp - B), (0, Kp - K)))

        # N leads so a megacore split gives each TC disjoint weight columns.
        grid = (Np // tn, Mp // tm, Kp // tk)

        acc_in_out = jnp.dtype(out_dtype) == jnp.dtype(jnp.float32)
        kernel = _h_i_kernel_acc_in_out if acc_in_out else _h_i_kernel_scratch
        scratch = [] if acc_in_out else [pltpu.VMEM((tm, tn), jnp.float32)]

        cost = pl.CostEstimate(
            flops=2 * B * K * N,
            transcendentals=0,
            bytes_accessed=(
                x.size * x.dtype.itemsize
                + w_kn.size * w_kn.dtype.itemsize
                + b_row.size * b_row.dtype.itemsize
                + B * N * jnp.dtype(out_dtype).itemsize
            ),
        )

        out = pl.pallas_call(
            kernel,
            out_shape=jax.ShapeDtypeStruct((Mp, Np), out_dtype),
            grid_spec=pltpu.PrefetchScalarGridSpec(
                num_scalar_prefetch=0,
                grid=grid,
                in_specs=[
                    pl.BlockSpec((tm, tk), lambda j, i, k: (i, k)),  # features
                    pl.BlockSpec((tk, tn), lambda j, i, k: (k, j)),  # W [K, N]
                    pl.BlockSpec((1, tn), lambda j, i, k: (0, j)),   # bias row
                ],
                out_specs=pl.BlockSpec((tm, tn), lambda j, i, k: (i, j)),
                scratch_shapes=scratch,
            ),
            compiler_params=pltpu.CompilerParams(
                dimension_semantics=("parallel", "parallel", "arbitrary"),
            ),
            cost_estimate=cost,
        )(x, w_kn, b_row)

        if (Mp, Np) != (B, N):
            out = out[:B, :N]
        return out

    return forward


def h_i_forward(features, weights, bias, *, compute_dtype=jnp.bfloat16):
    """One-off convenience wrapper.  For repeated calls, build the closure
    once with make_h_i_forward so parameter transpose/pad/cast is amortized."""
    return make_h_i_forward(weights, bias, compute_dtype=compute_dtype)(features)


def init_h_i_params(key, in_features, out_features, dtype=jnp.float32):
    """Deterministic init matching nn.init.uniform_(-sqrt(3/in), +sqrt(3/in))."""
    bound = math.sqrt(3.0 / in_features)
    kw, kb = jax.random.split(key)
    weights = jax.random.uniform(
        kw, (out_features, in_features), dtype=dtype, minval=-bound, maxval=bound
    )
    bias = jax.random.uniform(
        kb, (out_features,), dtype=dtype, minval=-bound, maxval=bound
    )
    return weights, bias


def _matched_precision_ref(features, weights, bias, compute_dtype):
    """Reference with the same input rounding as the kernel (bf16 inputs,
    f32 accumulation)."""
    x = features.astype(compute_dtype).astype(jnp.float32)
    w = weights.astype(compute_dtype).astype(jnp.float32)
    return jnp.dot(x, w.T, precision=lax.Precision.HIGHEST) + bias.astype(jnp.float32)


if __name__ == "__main__":
    key = jax.random.PRNGKey(0)

    # --- small shapes consistent with the module -------------------------
    k_x, k_p = jax.random.split(key)
    batch, in_features, out_features = 8, 32, 16
    features = jax.random.normal(k_x, (batch, in_features), dtype=jnp.float32)
    weights, bias = init_h_i_params(k_p, in_features, out_features)

    fwd = make_h_i_forward(weights, bias)          # params prepared once
    out = jax.block_until_ready(fwd(features))

    ref_matched = _matched_precision_ref(features, weights, bias, jnp.bfloat16)
    ref_f32 = features @ weights.T + bias
    assert out.shape == (batch, out_features)
    assert out.dtype == jnp.float32
    assert jnp.allclose(out, ref_matched, atol=1e-3, rtol=1e-3)
    assert jnp.allclose(out, ref_f32, atol=1e-1, rtol=1e-1)

    # --- larger case exercising multi-tile grid, padding, K accumulation --
    k_x2, k_p2 = jax.random.split(jax.random.PRNGKey(1))
    B2, K2, N2 = 640, 1152, 768
    feats2 = jax.random.normal(k_x2, (B2, K2), dtype=jnp.float32)
    w2, b2 = init_h_i_params(k_p2, K2, N2)

    fwd2 = make_h_i_forward(w2, b2)
    out2 = jax.block_until_ready(fwd2(feats2))

    ref2 = _matched_precision_ref(feats2, w2, b2, jnp.bfloat16)
    assert out2.shape == (B2, N2)
    assert jnp.allclose(out2, ref2, atol=5e-3, rtol=5e-3)

    print("KERNEL_OK")
</pallas_src>

<mosaic_0001>
module attributes {stable_mosaic.version = 11 : i64} {
  func.func @_h_i_kernel_acc_in_out(%arg0: i32, %arg1: i32, %arg2: i32, %arg3: memref<16x128xbf16, #tpu.memory_space<vmem>>, %arg4: memref<128x128xbf16, #tpu.memory_space<vmem>>, %arg5: memref<1x128xf32, #tpu.memory_space<vmem>>, %arg6: memref<16x128xf32, #tpu.memory_space<vmem>>) attributes {dimension_semantics = [#tpu.dimension_semantics<parallel>, #tpu.dimension_semantics<parallel>, #tpu.dimension_semantics<arbitrary>], iteration_bounds = array<i64: 1, 1, 1>, scalar_prefetch = 0 : i64, scratch_operands = 0 : i64, tpu.core_type = #tpu.core_type<tc>, window_params = [{transform_indices = @transform_0, window_bounds = array<i64: 16, 128>}, {transform_indices = @transform_1, window_bounds = array<i64: 128, 128>}, {transform_indices = @transform_2, window_bounds = array<i64: 1, 128>}, {transform_indices = @transform_3, window_bounds = array<i64: 16, 128>}]} {
    %c0_i32 = arith.constant 0 : i32
    %0 = arith.cmpi eq, %arg2, %c0_i32 : i32
    %1 = arith.extui %0 : i1 to i32
    %c0_i32_0 = arith.constant 0 : i32
    %2 = arith.cmpi ne, %1, %c0_i32_0 : i32
    scf.if %2 {
      %cst_10 = arith.constant 0.000000e+00 : f32
      %12 = vector.broadcast %cst_10 : f32 to vector<16x128xf32>
      %c0_11 = arith.constant 0 : index
      %c0_12 = arith.constant 0 : index
      %13 = vector.load %arg6[%c0_11, %c0_12] : memref<16x128xf32, #tpu.memory_space<vmem>>, vector<16x128xf32>
      tpu.vector_store %arg6[%c0_11, %c0_12], %12 {strides = array<i32>} : memref<16x128xf32, #tpu.memory_space<vmem>>, vector<16x128xf32>,
    } else {
    }
    %c0 = arith.constant 0 : index
    %c0_1 = arith.constant 0 : index
    %3 = vector.load %arg6[%c0, %c0_1] : memref<16x128xf32, #tpu.memory_space<vmem>>, vector<16x128xf32>
    %c0_2 = arith.constant 0 : index
    %c0_3 = arith.constant 0 : index
    %4 = vector.load %arg3[%c0_2, %c0_3] : memref<16x128xbf16, #tpu.memory_space<vmem>>, vector<16x128xbf16>
    %c0_4 = arith.constant 0 : index
    %c0_5 = arith.constant 0 : index
    %5 = vector.load %arg4[%c0_4, %c0_5] : memref<128x128xbf16, #tpu.memory_space<vmem>>, vector<128x128xbf16>
    %cst = arith.constant dense<0.000000e+00> : vector<16x128xf32>
    %6 = tpu.matmul %4, %5, %cst {dimension_numbers = #tpu.dot_dimension_numbers<[1], [0], [0], [1], [0, 0, 1, 1], [], []>} : vector<16x128xbf16>, vector<128x128xbf16>, vector<16x128xf32> -> vector<16x128xf32>
    %7 = arith.addf %3, %6 : vector<16x128xf32>
    %c0_6 = arith.constant 0 : index
    %c0_7 = arith.constant 0 : index
    %8 = vector.load %arg6[%c0_6, %c0_7] : memref<16x128xf32, #tpu.memory_space<vmem>>, vector<16x128xf32>
    tpu.vector_store %arg6[%c0_6, %c0_7], %7 {strides = array<i32>} : memref<16x128xf32, #tpu.memory_space<vmem>>, vector<16x128xf32>,
    %c0_i32_8 = arith.constant 0 : i32
    %9 = arith.cmpi eq, %arg2, %c0_i32_8 : i32
    %10 = arith.extui %9 : i1 to i32
    %c0_i32_9 = arith.constant 0 : i32
    %11 = arith.cmpi ne, %10, %c0_i32_9 : i32
    scf.if %11 {
      %c0_10 = arith.constant 0 : index
      %c0_11 = arith.constant 0 : index
      %12 = vector.load %arg6[%c0_10, %c0_11] : memref<16x128xf32, #tpu.memory_space<vmem>>, vector<16x128xf32>
      %c0_12 = arith.constant 0 : index
      %c0_13 = arith.constant 0 : index
      %13 = vector.load %arg5[%c0_12, %c0_13] : memref<1x128xf32, #tpu.memory_space<vmem>>, vector<1x128xf32>
      %14 = vector.broadcast %13 : vector<1x128xf32> to vector<16x128xf32>
      %15 = arith.addf %12, %14 : vector<16x128xf32>
      %c0_14 = arith.constant 0 : index
      %c0_15 = arith.constant 0 : index
      %16 = vector.load %arg6[%c0_14, %c0_15] : memref<16x128xf32, #tpu.memory_space<vmem>>, vector<16x128xf32>
      tpu.vector_store %arg6[%c0_14, %c0_15], %15 {strides = array<i32>} : memref<16x128xf32, #tpu.memory_space<vmem>>, vector<16x128xf32>,
    } else {
    }
    return
  }
  func.func @transform_0(%arg0: i32, %arg1: i32, %arg2: i32) -> (i32, i32) {
    %c0_i32 = arith.constant 0 : i32
    return %arg1, %arg2 : i32, i32
  }
  func.func @transform_1(%arg0: i32, %arg1: i32, %arg2: i32) -> (i32, i32) {
    %c0_i32 = arith.constant 0 : i32
    return %arg2, %arg0 : i32, i32
  }
  func.func @transform_2(%arg0: i32, %arg1: i32, %arg2: i32) -> (i32, i32) {
    %c0_i32 = arith.constant 0 : i32
    %c0_i32_0 = arith.constant 0 : i32
    return %c0_i32, %arg0 : i32, i32
  }
  func.func @transform_3(%arg0: i32, %arg1: i32, %arg2: i32) -> (i32, i32) {
    %c0_i32 = arith.constant 0 : i32
    return %arg1, %arg0 : i32, i32
  }
}

</mosaic_0001>

<bundles_post_ra>
// kernel: forward.1
= control target key start
LH: loop header
LB: loop body
LE: loop exit
PB: predicated region body
PF: predicated region fallthrough
CT: control target
= control target key end

     0   :  { %8 = vsyncpa [#allocation3], 0  ;;  %s250_s12 = smov [#allocation2]   ;;  %s290_s0 = inlined_call_operand.vmem [shape: bf16[16,128], index: 0, kind: input, shape index: {}]   ;;  %s291_s1 = inlined_call_operand.hbm [shape: bf16[128,128], index: 1, kind: input, shape index: {}]   ;;  %s292_s2 = inlined_call_operand.vmem [shape: f32[1,128], index: 2, kind: input, shape index: {}]   ;;  %s293_s3 = inlined_call_operand.vmem [shape: f32[16,128], index: 3, kind: output, shape index: {}]  }
   0x1   :  { %s16_s13 = sshll.u32 %s250_s12, 4  ;;  %s17_s13 = int_to_ptr.vmem [resolvable:$true] %s16_s13 }
   0x2   :  { %s236_s14 = scalar_lea.vmem %s17_s13, 1024  ;;  %p241_p1 = scmp.lt.s32.totalorder %s17_s13, %s17_s13 }
   0x3   :  { %p237_p0 = scmp.ne.s32.totalorder %s17_s13, %s236_s14  ;;  %p242_p2 = scmp.lt.s32.totalorder %s236_s14, %s236_s14 }
   0x5   :  { %p243_p3 = por %p242_p2, %p241_p1 }
   0x7   :  { %p244_p4 = pnand %p243_p3, %p237_p0 }
   0x9   :  { %247 = shalt.err (!%p244_p4)
}
   0xa   :  { %s251_s15 = smov 64   ;;  %s252_s16 = smov 4  }
   0xb   :  { %22 = dma.hbm_to_vmem [thread:$0]  %s291_s1, 1024, %s17_s13, [#allocation3], %s251_s15, %s251_s15, %s252_s16  }
   0xc   :  { %248 = dma.done.wait [#allocation3], 1024  }
   0xd   :  { %249 = vsyncadd [#allocation3], 4294966272  ;;  %v253_v0 = vmov 0.0   ;;  %vm254_vm0 = vmmov 0   ;;  %v219_v1 = vld [vmem:[#allocation2 + $0x38] sm:$0xff]   ;;  %v220_v2 = vld [vmem:[#allocation2 + $0x30] sm:$0xff]  }
   0xe   :  { %194 = vmatprep.subr.bf16.mxu0 %v253_v0  ;;  %210 = vmatprep.mubr.msk.bf16.mxu0 %vm254_vm0, %v253_v0  ;;  %v221_v3 = vld [vmem:[#allocation2 + $0x28] sm:$0xff]   ;;  %v222_v4 = vld [vmem:[#allocation2 + $0x20] sm:$0xff]   ;;  %v223_v5 = vld [vmem:[#allocation2 + $0x18] sm:$0xff]  }
   0xf   :  { %195 = vmatpush3.bf16.msra.mxu0 %v219_v1  ;;  %v224_v6 = vld [vmem:[#allocation2 + $0x10] sm:$0xff]   ;;  %v225_v7 = vld [vmem:[#allocation2 + $0x8] sm:$0xff]   ;;  %v226_v8 = vld [vmem:[#allocation2] sm:$0xff]  }
  0x10   :  { %196 = vmatprep.subr.bf16.mxu0 %v253_v0  ;;  %v227_v9 = vld [vmem:[%s290_s0] sm:$0xff]  }
  0x11   :  { %v184_v11 = vld [vmem:[%s292_s2] ss:$0 sm:$0xff] }
  0x13   :  { %197 = vmatpush3.bf16.msra.mxu0 %v220_v2 }
  0x14   :  { %198 = vmatprep.subr.bf16.mxu0 %v253_v0 }
  0x17   :  { %199 = vmatpush3.bf16.msra.mxu0 %v221_v3 }
  0x18   :  { %200 = vmatprep.subr.bf16.mxu0 %v253_v0 }
  0x1b   :  { %201 = vmatpush3.bf16.msra.mxu0 %v222_v4 }
  0x1c   :  { %202 = vmatprep.subr.bf16.mxu0 %v253_v0 }
  0x1f   :  { %203 = vmatpush3.bf16.msra.mxu0 %v223_v5 }
  0x20   :  { %204 = vmatprep.subr.bf16.mxu0 %v253_v0 }
  0x23   :  { %205 = vmatpush3.bf16.msra.mxu0 %v224_v6 }
  0x24   :  { %206 = vmatprep.subr.bf16.mxu0 %v253_v0 }
  0x27   :  { %207 = vmatpush3.bf16.msra.mxu0 %v225_v7 }
  0x28   :  { %208 = vmatprep.subr.bf16.mxu0 %v253_v0 }
  0x2b   :  { %209 = vmatpush3.bf16.msra.mxu0 %v226_v8 }
  0x2e   :  { %211 = vmatmul.mubr.bf16.vlgmr.msra.gmra.mxu0 %v227_v9 }
  0xee   :  { %v143_v10 = vpop.f32.mrf.mxu0 }
  0xef   :  { %v166_v13 = vadd.f32 %v184_v11, %v143_v10 }
  0xf0   :  { %v212_v12 = vpop.f32.mrf.mxu0 }
  0xf1   :  { %168 = vst [vmem:[%s293_s3] sm:$0xff] %v166_v13 }
  0xf2   :  { %v146_v14 = vpop.f32.mrf.mxu0 }
  0xf3   :  { %v167_v16 = vadd.f32 %v184_v11, %v146_v14 }
  0xf4   :  { %v213_v15 = vpop.f32.mrf.mxu0 }
  0xf5   :  { %169 = vst [vmem:[%s293_s3 + $0x8] sm:$0xff] %v167_v16 }
  0xf6   :  { %174 = vsyncpa [#allocation3], 1 }

</bundles_post_ra>
